<compile_context>
chip_gen: v7x
topology: tpu7x:2x2x1
jax: 0.10.0
libtpu: 0.0.40
codegen_flags: <defaults>
</compile_context>

<pallas_src>
import functools
import math

import jax
import jax.numpy as jnp
from jax import lax
from jax.experimental import pallas as pl
from jax.experimental.pallas import tpu as pltpu


def _linear_silu_kernel(x_ref, w_ref, b_ref, o_ref, acc_ref):
    # x_ref: (tm, tk)   w_ref: (tn, tk)   b_ref: (1, tn)
    # o_ref: (tm, tn)   acc_ref: (tm, tn) f32 scratch
    k = pl.program_id(2)

    @pl.when(k == 0)
    def _():
        acc_ref[...] = jnp.zeros_like(acc_ref)

    # x @ w.T without materializing a transposed weight in HBM:
    # contract x's last dim against w's last dim on the MXU.
    acc_ref[...] += lax.dot_general(
        x_ref[...],
        w_ref[...],
        dimension_numbers=(((1,), (1,)), ((), ())),
        preferred_element_type=jnp.float32,
    )

    @pl.when(k == pl.num_programs(2) - 1)
    def _():
        z = acc_ref[...] + b_ref[...].astype(jnp.float32)
        # SiLU(z) = z * sigmoid(z) = z / (1 + exp(-z)); exp + approx reciprocal
        # both live in the EUP slot -> nearly free epilogue.
        sig = pl.reciprocal(1.0 + jnp.exp(-z), approx=True)
        o_ref[...] = (z * sig).astype(o_ref.dtype)


def _round_up(x: int, m: int) -> int:
    return ((x + m - 1) // m) * m


@functools.partial(jax.jit, static_argnames=("tm", "tn", "tk"))
def linear_silu(x, weight, bias, *, tm=256, tn=512, tk=512):
    """x: (..., in_dim); weight: (out_dim, in_dim) (PyTorch layout); bias: (out_dim,)."""
    in_dim = x.shape[-1]
    out_dim = weight.shape[0]
    lead_shape = x.shape[:-1]
    m = math.prod(lead_shape) if lead_shape else 1

    # Shrink tiles for small problems while keeping (8, 128) alignment.
    tm = min(tm, _round_up(m, 8))
    tn = min(tn, _round_up(out_dim, 128))
    tk = min(tk, _round_up(in_dim, 128))

    m_pad = _round_up(m, tm)
    n_pad = _round_up(out_dim, tn)
    k_pad = _round_up(in_dim, tk)

    x2 = x.reshape(m, in_dim)
    if (m_pad, k_pad) != (m, in_dim):
        x2 = jnp.pad(x2, ((0, m_pad - m), (0, k_pad - in_dim)))
    w = weight
    if (n_pad, k_pad) != (out_dim, in_dim):
        w = jnp.pad(w, ((0, n_pad - out_dim), (0, k_pad - in_dim)))
    b2 = bias.reshape(1, out_dim)
    if n_pad != out_dim:
        b2 = jnp.pad(b2, ((0, 0), (0, n_pad - out_dim)))

    grid = (m_pad // tm, n_pad // tn, k_pad // tk)

    out_itemsize = jnp.dtype(x.dtype).itemsize
    cost = pl.CostEstimate(
        flops=2 * m_pad * k_pad * n_pad,
        transcendentals=m_pad * n_pad,
        bytes_accessed=(
            x2.size * jnp.dtype(x2.dtype).itemsize
            + w.size * jnp.dtype(w.dtype).itemsize
            + b2.size * jnp.dtype(b2.dtype).itemsize
            + m_pad * n_pad * out_itemsize
        ),
    )

    out = pl.pallas_call(
        _linear_silu_kernel,
        out_shape=jax.ShapeDtypeStruct((m_pad, n_pad), x.dtype),
        grid_spec=pltpu.PrefetchScalarGridSpec(
            num_scalar_prefetch=0,
            grid=grid,
            in_specs=[
                pl.BlockSpec((tm, tk), lambda i, j, k: (i, k)),   # x tile
                pl.BlockSpec((tn, tk), lambda i, j, k: (j, k)),   # weight tile (out_dim, in_dim)
                pl.BlockSpec((1, tn), lambda i, j, k: (0, j)),    # bias tile
            ],
            out_specs=pl.BlockSpec((tm, tn), lambda i, j, k: (i, j)),
            scratch_shapes=[pltpu.VMEM((tm, tn), jnp.float32)],
        ),
        compiler_params=pltpu.CompilerParams(
            dimension_semantics=("parallel", "parallel", "arbitrary"),
            # Default tiles use only a few MiB double-buffered; 32 MiB leaves
            # headroom even on v7x's 64 MiB/TC VMEM.
            vmem_limit_bytes=32 * 1024 * 1024,
        ),
        cost_estimate=cost,
    )(x2, w, b2)

    out = out[:m, :out_dim]
    return out.reshape(*lead_shape, out_dim)


def init_linear_params(key, in_dim, out_dim, dtype=jnp.float32):
    """Deterministic init mimicking torch.nn.Linear default (uniform +/- 1/sqrt(in_dim))."""
    kw, kb = jax.random.split(key)
    bound = 1.0 / jnp.sqrt(jnp.float32(in_dim))
    weight = jax.random.uniform(kw, (out_dim, in_dim), dtype, -bound, bound)
    bias = jax.random.uniform(kb, (out_dim,), dtype, -bound, bound)
    return weight, bias


if __name__ == "__main__":
    key = jax.random.PRNGKey(0)
    k_x, k_p = jax.random.split(key)

    batch, seq, in_dim, out_dim = 2, 8, 32, 64
    x = jax.random.normal(k_x, (batch, seq, in_dim), dtype=jnp.float32)
    weight, bias = init_linear_params(k_p, in_dim, out_dim)

    out = jax.block_until_ready(linear_silu(x, weight, bias))

    # Sanity check vs pure-JAX reference (approx reciprocal -> modest tolerance).
    ref = x @ weight.T + bias
    ref = ref * jax.nn.sigmoid(ref)
    assert out.shape == (batch, seq, out_dim)
    assert jnp.allclose(out, ref, atol=5e-3, rtol=5e-3), float(
        jnp.max(jnp.abs(out - ref))
    )

    print("KERNEL_OK")
</pallas_src>

<mosaic_0001>
module attributes {stable_mosaic.version = 11 : i64} {
  func.func @_linear_silu_kernel(%arg0: i32, %arg1: i32, %arg2: i32, %arg3: memref<16x128xf32, #tpu.memory_space<vmem>>, %arg4: memref<128x128xf32, #tpu.memory_space<vmem>>, %arg5: memref<1x128xf32, #tpu.memory_space<vmem>>, %arg6: memref<16x128xf32, #tpu.memory_space<vmem>>, %arg7: memref<16x128xf32, #tpu.memory_space<vmem>>) attributes {dimension_semantics = [#tpu.dimension_semantics<parallel>, #tpu.dimension_semantics<parallel>, #tpu.dimension_semantics<arbitrary>], iteration_bounds = array<i64: 1, 1, 1>, scalar_prefetch = 0 : i64, scratch_operands = 1 : i64, tpu.core_type = #tpu.core_type<tc>, window_params = [{transform_indices = @transform_0, window_bounds = array<i64: 16, 128>}, {transform_indices = @transform_1, window_bounds = array<i64: 128, 128>}, {transform_indices = @transform_2, window_bounds = array<i64: 1, 128>}, {transform_indices = @transform_3, window_bounds = array<i64: 16, 128>}]} {
    %c0_i32 = arith.constant 0 : i32
    %0 = arith.cmpi eq, %arg2, %c0_i32 : i32
    %1 = arith.extui %0 : i1 to i32
    %c0_i32_0 = arith.constant 0 : i32
    %2 = arith.cmpi ne, %1, %c0_i32_0 : i32
    scf.if %2 {
      %cst_10 = arith.constant 0.000000e+00 : f32
      %12 = vector.broadcast %cst_10 : f32 to vector<16x128xf32>
      %c0_11 = arith.constant 0 : index
      %c0_12 = arith.constant 0 : index
      %13 = vector.load %arg7[%c0_11, %c0_12] : memref<16x128xf32, #tpu.memory_space<vmem>>, vector<16x128xf32>
      tpu.vector_store %arg7[%c0_11, %c0_12], %12 {strides = array<i32>} : memref<16x128xf32, #tpu.memory_space<vmem>>, vector<16x128xf32>,
    } else {
    }
    %c0 = arith.constant 0 : index
    %c0_1 = arith.constant 0 : index
    %3 = vector.load %arg7[%c0, %c0_1] : memref<16x128xf32, #tpu.memory_space<vmem>>, vector<16x128xf32>
    %c0_2 = arith.constant 0 : index
    %c0_3 = arith.constant 0 : index
    %4 = vector.load %arg3[%c0_2, %c0_3] : memref<16x128xf32, #tpu.memory_space<vmem>>, vector<16x128xf32>
    %c0_4 = arith.constant 0 : index
    %c0_5 = arith.constant 0 : index
    %5 = vector.load %arg4[%c0_4, %c0_5] : memref<128x128xf32, #tpu.memory_space<vmem>>, vector<128x128xf32>
    %cst = arith.constant dense<0.000000e+00> : vector<16x128xf32>
    %6 = tpu.matmul %4, %5, %cst {dimension_numbers = #tpu.dot_dimension_numbers<[1], [1], [0], [0], [0, 0, 1, 0], [], []>} : vector<16x128xf32>, vector<128x128xf32>, vector<16x128xf32> -> vector<16x128xf32>
    %7 = arith.addf %3, %6 : vector<16x128xf32>
    %c0_6 = arith.constant 0 : index
    %c0_7 = arith.constant 0 : index
    %8 = vector.load %arg7[%c0_6, %c0_7] : memref<16x128xf32, #tpu.memory_space<vmem>>, vector<16x128xf32>
    tpu.vector_store %arg7[%c0_6, %c0_7], %7 {strides = array<i32>} : memref<16x128xf32, #tpu.memory_space<vmem>>, vector<16x128xf32>,
    %c0_i32_8 = arith.constant 0 : i32
    %9 = arith.cmpi eq, %arg2, %c0_i32_8 : i32
    %10 = arith.extui %9 : i1 to i32
    %c0_i32_9 = arith.constant 0 : i32
    %11 = arith.cmpi ne, %10, %c0_i32_9 : i32
    scf.if %11 {
      %c0_10 = arith.constant 0 : index
      %c0_11 = arith.constant 0 : index
      %12 = vector.load %arg7[%c0_10, %c0_11] : memref<16x128xf32, #tpu.memory_space<vmem>>, vector<16x128xf32>
      %c0_12 = arith.constant 0 : index
      %c0_13 = arith.constant 0 : index
      %13 = vector.load %arg5[%c0_12, %c0_13] : memref<1x128xf32, #tpu.memory_space<vmem>>, vector<1x128xf32>
      %14 = vector.broadcast %13 : vector<1x128xf32> to vector<16x128xf32>
      %15 = arith.addf %12, %14 : vector<16x128xf32>
      %cst_14 = arith.constant 0.000000e+00 : f32
      %16 = vector.broadcast %cst_14 : f32 to vector<16x128xf32>
      %17 = arith.subf %16, %15 : vector<16x128xf32>
      %18 = math.exp %17 : vector<16x128xf32>
      %cst_15 = arith.constant 1.000000e+00 : f32
      %19 = vector.broadcast %cst_15 : f32 to vector<16x128xf32>
      %20 = arith.addf %19, %18 : vector<16x128xf32>
      %21 = tpu.reciprocal %20 {approx = true} : vector<16x128xf32> -> vector<16x128xf32>
      %22 = arith.mulf %15, %21 : vector<16x128xf32>
      %c0_16 = arith.constant 0 : index
      %c0_17 = arith.constant 0 : index
      %23 = vector.load %arg6[%c0_16, %c0_17] : memref<16x128xf32, #tpu.memory_space<vmem>>, vector<16x128xf32>
      tpu.vector_store %arg6[%c0_16, %c0_17], %22 {strides = array<i32>} : memref<16x128xf32, #tpu.memory_space<vmem>>, vector<16x128xf32>,
    } else {
    }
    return
  }
  func.func @transform_0(%arg0: i32, %arg1: i32, %arg2: i32) -> (i32, i32) {
    %c0_i32 = arith.constant 0 : i32
    return %arg0, %arg2 : i32, i32
  }
  func.func @transform_1(%arg0: i32, %arg1: i32, %arg2: i32) -> (i32, i32) {
    %c0_i32 = arith.constant 0 : i32
    return %arg1, %arg2 : i32, i32
  }
  func.func @transform_2(%arg0: i32, %arg1: i32, %arg2: i32) -> (i32, i32) {
    %c0_i32 = arith.constant 0 : i32
    %c0_i32_0 = arith.constant 0 : i32
    return %c0_i32, %arg1 : i32, i32
  }
  func.func @transform_3(%arg0: i32, %arg1: i32, %arg2: i32) -> (i32, i32) {
    %c0_i32 = arith.constant 0 : i32
    return %arg0, %arg1 : i32, i32
  }
}

</mosaic_0001>

<bundles_post_ra>
// kernel: linear_silu.1
= control target key start
LH: loop header
LB: loop body
LE: loop exit
PB: predicated region body
PF: predicated region fallthrough
CT: control target
= control target key end

     0   :  { %s328_s1 = inlined_call_operand.vmem [shape: f32[128,128], index: 1, kind: input, shape index: {}]   ;;  %s329_s0 = inlined_call_operand.vmem [shape: f32[16,128], index: 0, kind: input, shape index: {}]   ;;  %s330_s2 = inlined_call_operand.vmem [shape: f32[1,128], index: 2, kind: input, shape index: {}]   ;;  %s331_s3 = inlined_call_operand.vmem [shape: f32[16,128], index: 3, kind: output, shape index: {}]  }
   0x1   :  { %v24_v0 = vld [vmem:[%s328_s1] sm:$0xff]  ;;  %v25_v1 = vld [vmem:[%s328_s1 + $0x8] sm:$0xff]  ;;  %v26_v2 = vld [vmem:[%s328_s1 + $0x10] sm:$0xff] }
   0x2   :  { %v205_v3 = vpack.c.bf16 %v25_v1, %v24_v0  ;;  %v27_v4 = vld [vmem:[%s328_s1 + $0x18] sm:$0xff]  ;;  %v22_v6 = vld [vmem:[%s329_s0] sm:$0xff]  ;;  %v29_v8 = vld [vmem:[%s328_s1 + $0x28] sm:$0xff] }
   0x3   :  { %v209_v5 = vpack.c.bf16 %v27_v4, %v26_v2  ;;  %v28_v7 = vld [vmem:[%s328_s1 + $0x20] sm:$0xff]  ;;  %202 = vmatprep.mubr.f32.mxu0 %v22_v6  ;;  %v30_v10 = vld [vmem:[%s328_s1 + $0x30] sm:$0xff]  ;;  %v31_v11 = vld [vmem:[%s328_s1 + $0x38] sm:$0xff] }
   0x4   :  { %206 = vmatprep.subr.bf16.mxu0 %v205_v3  ;;  %v213_v9 = vpack.c.bf16 %v29_v8, %v28_v7  ;;  %v217_v12 = vpack.c.bf16 %v31_v11, %v30_v10  ;;  %v32_v13 = vld [vmem:[%s328_s1 + $0x40] sm:$0xff]  ;;  %v33_v14 = vld [vmem:[%s328_s1 + $0x48] sm:$0xff]  ;;  %v34_v16 = vld [vmem:[%s328_s1 + $0x50] sm:$0xff] }
   0x5   :  { %208 = vmatpush3.bf16.xpose.msra.mxu0 %v205_v3  ;;  %v221_v15 = vpack.c.bf16 %v33_v14, %v32_v13  ;;  %v35_v17 = vld [vmem:[%s328_s1 + $0x58] sm:$0xff]  ;;  %v36_v19 = vld [vmem:[%s328_s1 + $0x60] sm:$0xff]  ;;  %v37_v20 = vld [vmem:[%s328_s1 + $0x68] sm:$0xff] }
   0x6   :  { %210 = vmatprep.subr.bf16.mxu0 %v209_v5  ;;  %v225_v18 = vpack.c.bf16 %v35_v17, %v34_v16  ;;  %v229_v21 = vpack.c.bf16 %v37_v20, %v36_v19  ;;  %v38_v22 = vld [vmem:[%s328_s1 + $0x70] sm:$0xff]  ;;  %v39_v23 = vld [vmem:[%s328_s1 + $0x78] sm:$0xff]  ;;  %v23_v25 = vld [vmem:[%s329_s0 + $0x8] sm:$0xff] }
   0x7   :  { %v233_v24 = vpack.c.bf16 %v39_v23, %v38_v22  ;;  %v151_v26 = vld [vmem:[%s330_s2] ss:$0 sm:$0xff] }
   0xd   :  { %212 = vmatpush3.bf16.xpose.msra.mxu0 %v209_v5 }
   0xe   :  { %214 = vmatprep.subr.bf16.mxu0 %v213_v9 }
  0x15   :  { %216 = vmatpush3.bf16.xpose.msra.mxu0 %v213_v9 }
  0x16   :  { %218 = vmatprep.subr.bf16.mxu0 %v217_v12 }
  0x1d   :  { %220 = vmatpush3.bf16.xpose.msra.mxu0 %v217_v12 }
  0x1e   :  { %222 = vmatprep.subr.bf16.mxu0 %v221_v15 }
  0x25   :  { %224 = vmatpush3.bf16.xpose.msra.mxu0 %v221_v15 }
  0x26   :  { %226 = vmatprep.subr.bf16.mxu0 %v225_v18 }
  0x2d   :  { %228 = vmatpush3.bf16.xpose.msra.mxu0 %v225_v18 }
  0x2e   :  { %230 = vmatprep.subr.bf16.mxu0 %v229_v21 }
  0x35   :  { %232 = vmatpush3.bf16.xpose.msra.mxu0 %v229_v21 }
  0x36   :  { %234 = vmatprep.subr.bf16.mxu0 %v233_v24 }
  0x3d   :  { %236 = vmatpush3.bf16.xpose.msra.mxu0 %v233_v24 }
  0x44   :  { %203 = vmatmul.mubr.f32.vlgmr.msra.gmra.mrb[0].mxu0 %v23_v25 }
 0x117   :  { %v204_v27 = vpop.f32.mrb[0].mxu0 }
 0x118   :  { %v132_v28 = vadd.f32 %v204_v27, %v151_v26  ;;  %v106_v29 = vpop.f32.mrb[1].mxu0 }
 0x119   :  { %v131_v30 = vadd.f32 %v151_v26, %v106_v29 }
 0x11a   :  { %v134_v31 = vsub.f32 0.0, %v132_v28 }
 0x11b   :  { %v133_v32 = vsub.f32 0.0, %v131_v30 }
 0x11c   :  { %v137_v33 = vmul.f32 1.442695, %v134_v31 }
 0x11d   :  { %v135_v34 = vmul.f32 1.442695, %v133_v32 }
 0x11e   :  { %237 = vpow2.f32 %v137_v33 }
 0x11f   :  { %239 = vpow2.f32 %v135_v34 }
 0x128   :  { %v238_v35 = vpop.eup %237 }
 0x129   :  { %v240_v36 = vpop.eup %239  ;;  %v140_v37 = vadd.f32 1.0, %v238_v35 }
 0x12a   :  { %v139_v38 = vadd.f32 1.0, %v240_v36 }
 0x12b   :  { %241 = vrcp.f32 %v140_v37 }
 0x12c   :  { %243 = vrcp.f32 %v139_v38 }
 0x135   :  { %v242_v39 = vpop.eup %241 }
 0x136   :  { %v244_v40 = vpop.eup %243  ;;  %v144_v41 = vmul.f32 %v242_v39, %v132_v28 }
 0x137   :  { %v143_v42 = vmul.f32 %v244_v40, %v131_v30 }
 0x138   :  { %146 = vst [vmem:[%s331_s3 + $0x8] sm:$0xff] %v144_v41 }
 0x139   :  { %145 = vst [vmem:[%s331_s3] sm:$0xff] %v143_v42 }

</bundles_post_ra>
